<compile_context>
chip_gen: v7x
topology: tpu7x:2x2x1
jax: 0.10.0
libtpu: 0.0.40
codegen_flags: <defaults>
</compile_context>

<pallas_src>
import jax
import jax.numpy as jnp
from jax.experimental import pallas as pl
from jax.experimental.pallas import tpu as pltpu

# hidden_dim = 200 corresponds to args.use_features == 'rdkit_2d'
HIDDEN_DIM = 200


def linear_kernel(x_ref, w_ref, b_ref, o_ref):
    # x_ref: (tm, H) f32 VMEM
    # w_ref: (1, H)  f32 VMEM (lane-dense, broadcast over batch rows)
    # b_ref: (1,)    f32 SMEM scalar
    # o_ref: (tm, 1) f32 VMEM
    prod = x_ref[...] * w_ref[...]                       # VPU
    y = jnp.sum(prod, axis=-1, keepdims=True)            # XLU lane reduce
    o_ref[...] = y + b_ref[0]                            # scalar bias folds into VPU add


def baseline_forward(features, weight, bias, *, tm=512):
    """features: (B, H) f32; weight: (1, H); bias: (1,) — matches nn.Linear(H, 1)."""
    features = features.astype(jnp.float32)
    B, H = features.shape
    w = weight.astype(jnp.float32).reshape(1, H)   # keep lane-dense, no transpose
    b = bias.astype(jnp.float32).reshape(1)        # scalar in SMEM

    # Row-tile size: full batch if small, otherwise a large multiple-of-8 tile.
    tm = min(tm, B)
    if tm != B and tm % 8 != 0:
        tm = max(8, (tm // 8) * 8)
    grid = (pl.cdiv(B, tm),)

    return pl.pallas_call(
        linear_kernel,
        out_shape=jax.ShapeDtypeStruct((B, 1), jnp.float32),
        grid=grid,
        in_specs=[
            pl.BlockSpec((tm, H), lambda i: (i, 0)),              # x tile
            pl.BlockSpec((1, H), lambda i: (0, 0)),               # weight (resident)
            pl.BlockSpec(memory_space=pltpu.SMEM),                # bias scalar
        ],
        out_specs=pl.BlockSpec((tm, 1), lambda i: (i, 0)),
        compiler_params=pltpu.CompilerParams(
            dimension_semantics=("parallel",),                    # megacore on v7x
        ),
    )(features, w, b)


if __name__ == "__main__":
    key = jax.random.PRNGKey(0)
    k_x, k_w, k_b, k_x2 = jax.random.split(key, 4)

    H = HIDDEN_DIM

    # Deterministic nn.Linear(H, 1)-shaped parameters.
    bound = 1.0 / jnp.sqrt(jnp.float32(H))
    weight = jax.random.uniform(k_w, (1, H), minval=-bound, maxval=bound, dtype=jnp.float32)
    bias = jax.random.uniform(k_b, (1,), minval=-bound, maxval=bound, dtype=jnp.float32)

    # Case 1: small batch (equivalent of `np.stack(features)` already stacked).
    B = 8
    x = jax.random.normal(k_x, (B, H), dtype=jnp.float32)
    out = jax.block_until_ready(baseline_forward(x, weight, bias))
    ref = x @ weight.T + bias
    assert out.shape == (B, 1)
    assert jnp.allclose(out, ref, atol=1e-5, rtol=1e-5)

    # Case 2: larger batch exercising the tiled grid + ragged last block.
    B2 = 520
    x2 = jax.random.normal(k_x2, (B2, H), dtype=jnp.float32)
    out2 = jax.block_until_ready(baseline_forward(x2, weight, bias))
    ref2 = x2 @ weight.T + bias
    assert out2.shape == (B2, 1)
    assert jnp.allclose(out2, ref2, atol=1e-4, rtol=1e-4)

    print("KERNEL_OK")
</pallas_src>

<mosaic_0001>
module attributes {stable_mosaic.version = 11 : i64} {
  func.func @linear_kernel(%arg0: i32, %arg1: memref<8x200xf32, #tpu.memory_space<vmem>>, %arg2: memref<1x200xf32, #tpu.memory_space<vmem>>, %arg3: memref<1xf32, #tpu.memory_space<smem>>, %arg4: memref<8x1xf32, #tpu.memory_space<vmem>>) attributes {dimension_semantics = [#tpu.dimension_semantics<parallel>], iteration_bounds = array<i64: 1>, scalar_prefetch = 0 : i64, scratch_operands = 0 : i64, tpu.core_type = #tpu.core_type<tc>, window_params = [{transform_indices = @transform_0, window_bounds = array<i64: 8, 200>}, {pipeline_mode = #tpu.pipeline_mode<synchronous>, transform_indices = @transform_1, window_bounds = array<i64: 1, 200>}, {transform_indices = @transform_2, window_bounds = array<i64: 1>}, {transform_indices = @transform_3, window_bounds = array<i64: 8, 1>}]} {
    %c0 = arith.constant 0 : index
    %c0_0 = arith.constant 0 : index
    %0 = vector.load %arg1[%c0, %c0_0] : memref<8x200xf32, #tpu.memory_space<vmem>>, vector<8x200xf32>
    %c0_1 = arith.constant 0 : index
    %c0_2 = arith.constant 0 : index
    %1 = vector.load %arg2[%c0_1, %c0_2] : memref<1x200xf32, #tpu.memory_space<vmem>>, vector<1x200xf32>
    %2 = vector.broadcast %1 : vector<1x200xf32> to vector<8x200xf32>
    %3 = arith.mulf %0, %2 : vector<8x200xf32>
    %cst = arith.constant dense<0.000000e+00> : vector<8xf32>
    %4 = vector.multi_reduction <add>, %3, %cst [1] : vector<8x200xf32> to vector<8xf32>
    %5 = vector.shape_cast %4 : vector<8xf32> to vector<8x1xf32>
    %c0_3 = arith.constant 0 : index
    %6 = memref.load %arg3[%c0_3] : memref<1xf32, #tpu.memory_space<smem>>
    %7 = vector.broadcast %6 : f32 to vector<8x1xf32>
    %8 = arith.addf %5, %7 : vector<8x1xf32>
    %c0_4 = arith.constant 0 : index
    %c0_5 = arith.constant 0 : index
    %9 = vector.load %arg4[%c0_4, %c0_5] : memref<8x1xf32, #tpu.memory_space<vmem>>, vector<8x1xf32>
    tpu.vector_store %arg4[%c0_4, %c0_5], %8 {strides = array<i32>} : memref<8x1xf32, #tpu.memory_space<vmem>>, vector<8x1xf32>,
    return
  }
  func.func @transform_0(%arg0: i32) -> (i32, i32) {
    %c0_i32 = arith.constant 0 : i32
    %c0_i32_0 = arith.constant 0 : i32
    return %arg0, %c0_i32 : i32, i32
  }
  func.func @transform_1(%arg0: i32) -> (i32, i32) {
    %c0_i32 = arith.constant 0 : i32
    %c0_i32_0 = arith.constant 0 : i32
    %c0_i32_1 = arith.constant 0 : i32
    return %c0_i32, %c0_i32_0 : i32, i32
  }
  func.func @transform_2(%arg0: i32) -> i32 {
    %c0_i32 = arith.constant 0 : i32
    %c0_i32_0 = arith.constant 0 : i32
    return %c0_i32 : i32
  }
  func.func @transform_3(%arg0: i32) -> (i32, i32) {
    %c0_i32 = arith.constant 0 : i32
    %c0_i32_0 = arith.constant 0 : i32
    return %arg0, %c0_i32 : i32, i32
  }
}

</mosaic_0001>

<bundles_post_ra>
// kernel: tpu_custom_call.1
= control target key start
LH: loop header
LB: loop body
LE: loop exit
PB: predicated region body
PF: predicated region fallthrough
CT: control target
= control target key end

     0   :  { %9 = vsyncpa [#allocation4], 0  ;;  %s83_s12 = smov [#allocation3]   ;;  %s125_s0 = inlined_call_operand.hbm [shape: f32[8,200], index: 0, kind: input, shape index: {}]   ;;  %s126_s1 = inlined_call_operand.vmem [shape: f32[1,200], index: 1, kind: input, shape index: {}]   ;;  %s127_s2 = inlined_call_operand.<no memory space> [shape: f32[1], index: 2, kind: input, shape index: {}]   ;;  %s128_s3 = inlined_call_operand.vmem [shape: f32[8,1], index: 3, kind: output, shape index: {}]  }
   0x1   :  { %s16_s13 = sshll.u32 %s83_s12, 4  ;;  %s59_s16 = scalar_lea.hbm %s125_s0, 256  ;;  %s17_s13 = int_to_ptr.vmem [resolvable:$true] %s16_s13 }
   0x2   :  { %p60_p0 = scmp.ne.s32.totalorder %s125_s0, %s59_s16  ;;  %p63_p1 = scmp.lt.u32.totalorder %s59_s16, %s125_s0 }
   0x4   :  { %p65_p2 = pnand %p63_p1, %p60_p0 }
   0x6   :  { %68 = shalt.err (!%p65_p2)
}
   0x7   :  { %s69_s21 = scalar_lea.vmem %s17_s13, 256  ;;  %p74_p4 = scmp.lt.s32.totalorder %s17_s13, %s17_s13 }
   0x8   :  { %p70_p3 = scmp.ne.s32.totalorder %s17_s13, %s69_s21  ;;  %p75_p5 = scmp.lt.s32.totalorder %s69_s21, %s69_s21 }
   0xa   :  { %p76_p6 = por %p75_p5, %p74_p4 }
   0xc   :  { %p77_p7 = pnand %p76_p6, %p70_p3 }
   0xe   :  { %80 = shalt.err (!%p77_p7)
}
   0xf   :  { %19 = dma.hbm_to_vmem [thread:$0]  %s125_s0, 256, %s17_s13, [#allocation4]  }
  0x10   :  { %81 = dma.done.wait [#allocation4], 256  }
  0x11   :  { %82 = vsyncadd [#allocation4], 4294967040  ;;  %v31_v0 = vlaneseq  ;;  %v27_v4 = vld [vmem:[#allocation3] sm:$0xff]  ;;  %v28_v5 = vld [vmem:[#allocation3 + $0x8] sm:$0xff]  ;;  %vm43_vm0 = vcmask 588800   ;;  %v49_v13 = vstv %s127_s2  ;;  %vm51_vm1 = vcmask 7168  }
  0x12   :  { %v29_v6 = vld [vmem:[%s126_s1] sm:$0x3] }
  0x13   :  { %v32_v1 = vshrl.u32 %v31_v0, 7 }
  0x15   :  { %v33_v2 = vsub.s32 0, %v32_v1  ;;  %v37_v3 = vsub.s32 1, %v32_v1 }
  0x17   :  { %v34_v7 = vrot.slane %v29_v6, %v33_v2  ;;  %v38_v8 = vrot.slane %v29_v6, %v37_v3 }
  0x19   :  { %v41_v9 = vmul.f32 %v34_v7, %v27_v4  ;;  %v42_v10 = vmul.f32 %v38_v8, %v28_v5 }
  0x1b   :  { %v44_v11 = vsel %vm43_vm0, %v42_v10, 0.0 }
  0x1c   :  { %v45_v12 = vadd.f32 %v44_v11, %v41_v9 }
  0x1e   :  { %46 = vadd.xlane.f32.xlu0 %v45_v12 }
  0xab   :  { %v47_v14 = vpop.xlane.xlu0 %46 }
  0xac   :  { %v50_v15 = vadd.f32 %v49_v13, %v47_v14 }
  0xae   :  { %52 = vst.msk [vmem:[%s128_s3] sm:$0xff] %vm51_vm1, %v50_v15 }
  0xaf   :  { %57 = vsyncpa [#allocation4], 1 }

</bundles_post_ra>
